<compile_context>
chip_gen: v7x
topology: tpu7x:2x2x1
jax: 0.10.0
libtpu: 0.0.40
codegen_flags: <defaults>
</compile_context>

<pallas_src>
import functools

import jax
import jax.numpy as jnp
from jax.experimental import pallas as pl
from jax.experimental.pallas import tpu as pltpu


def _apply_activation(y, activation: str):
    if activation == "relu":
        return jnp.maximum(y, 0.0)
    elif activation == "sigmoid":
        return jax.nn.sigmoid(y)
    elif activation == "tanh":
        return jnp.tanh(y)
    elif activation == "leaky_relu":
        return jnp.where(y >= 0.0, y, 0.01 * y)
    elif activation == "sin":
        return jnp.sin(y)
    else:
        raise ValueError(f"Unknown activation function: {activation}")


def _ffnn_kernel(x_ref, w_ref, b_ref, o_ref, *, activation: str):
    """Fused tiled linear + activation, accumulating directly into o_ref.

    x_ref : (bm, bk) bf16  input tile
    w_ref : (bk, bn) bf16  weight tile, pre-transposed (K, N) layout
    b_ref : (1,  bn) f32   bias tile for this N column
    o_ref : (bm, bn) f32   output tile; resident across the K grid axis
    """
    k = pl.program_id(2)

    @pl.when(k == 0)
    def _():
        o_ref[...] = jnp.zeros_like(o_ref)

    # bf16 x bf16 -> f32 on the MXU; accumulate into the resident output tile.
    o_ref[...] += jnp.dot(x_ref[...], w_ref[...],
                          preferred_element_type=jnp.float32)

    @pl.when(k == pl.num_programs(2) - 1)
    def _():
        # Fused epilogue: bias add (broadcast (1,bn) over rows) + activation,
        # all in f32, one lane-dense store.
        o_ref[...] = _apply_activation(o_ref[...] + b_ref[...], activation)


def _round_up(x: int, m: int) -> int:
    return pl.cdiv(x, m) * m


def prepare_ffnn_params(weight, bias, *, tn: int = 1024, tk: int = 512):
    """One-time preparation of the static FFNN parameters.

    weight: (out_dim, in_dim) float32  -- PyTorch nn.Linear layout
    bias:   (out_dim,)        float32

    Returns (w_kn_bf16_padded, bias_row_f32_padded, (N, K, bn, bk)).
    """
    N, K = weight.shape
    assert bias.shape == (N,), (bias.shape, N)

    bn = min(tn, _round_up(N, 128))
    bk = min(tk, _round_up(K, 128))
    Np, Kp = _round_up(N, bn), _round_up(K, bk)

    # Transpose to (K, N) once (static weight), cast to bf16 for the MXU,
    # zero-pad to tile multiples (zero K-padding contributes nothing).
    w_kn = jnp.asarray(weight, jnp.float32).T.astype(jnp.bfloat16)
    if (Kp, Np) != (K, N):
        w_kn = jnp.pad(w_kn, ((0, Kp - K), (0, Np - N)))

    b_row = jnp.asarray(bias, jnp.float32)
    if Np != N:
        b_row = jnp.pad(b_row, (0, Np - N))
    b_row = b_row.reshape(1, Np)

    return w_kn, b_row, (N, K, bn, bk)


def ffnn_forward_prepared(x, w_kn, b_row, dims, *, activation: str = "relu",
                          tm: int = 512):
    """Forward pass with pre-prepared (transposed / bf16 / padded) params."""
    N, K, bn, bk = dims
    Kp, Np = w_kn.shape

    orig_shape = x.shape
    assert orig_shape[-1] == K, (orig_shape, K)
    x2 = x.reshape(-1, K)
    M = x2.shape[0]

    # M tile: multiple of 16 (bf16 sublane packing), clamped to problem size.
    bm = min(tm, _round_up(M, 16))
    Mp = _round_up(M, bm)

    # v7x megacore: if both parallel grid axes would have a single tile and
    # there is enough work, split M so both TensorCores get a tile.
    if Mp // bm == 1 and Np // bn == 1 and M > 256:
        bm = _round_up(pl.cdiv(M, 2), 16)
        Mp = _round_up(M, bm)

    # Cast the activation tensor to bf16; pad only if not already tile-aligned.
    x_bf16 = x2.astype(jnp.bfloat16)
    if (Mp, Kp) != (M, K):
        x_bf16 = jnp.pad(x_bf16, ((0, Mp - M), (0, Kp - K)))

    grid = (Mp // bm, Np // bn, Kp // bk)
    kernel = functools.partial(_ffnn_kernel, activation=activation.lower())

    out_padded = pl.pallas_call(
        kernel,
        out_shape=jax.ShapeDtypeStruct((Mp, Np), jnp.float32),
        grid_spec=pltpu.PrefetchScalarGridSpec(
            num_scalar_prefetch=0,
            grid=grid,
            in_specs=[
                pl.BlockSpec((bm, bk), lambda i, j, k: (i, k)),   # x tile (bf16)
                pl.BlockSpec((bk, bn), lambda i, j, k: (k, j)),   # weight tile (K,N) (bf16)
                pl.BlockSpec((1, bn), lambda i, j, k: (0, j)),    # bias tile per N column (f32)
            ],
            out_specs=pl.BlockSpec((bm, bn), lambda i, j, k: (i, j)),
        ),
        compiler_params=pltpu.CompilerParams(
            # M/N independent (megacore-shardable), K is the accumulation axis.
            dimension_semantics=("parallel", "parallel", "arbitrary"),
        ),
    )(x_bf16, w_kn, b_row)

    if (Mp, Np) != (M, N):
        out_padded = out_padded[:M, :N]
    return out_padded.reshape(*orig_shape[:-1], N)


class FFNN:
    """Pallas equivalent of the fixed-random-weight FFNN forward pass.

    Prepares the static weight/bias once at construction (transpose to (K,N),
    bf16 cast, tile padding); per-call work only touches the activation tensor.
    """

    def __init__(self, weight, bias, activation: str = "relu",
                 *, tm: int = 512, tn: int = 1024, tk: int = 512):
        self.activation = activation.lower()
        self.tm = tm
        self.w_kn, self.b_row, self.dims = prepare_ffnn_params(weight, bias, tn=tn, tk=tk)

    def __call__(self, x):
        return ffnn_forward_prepared(x, self.w_kn, self.b_row, self.dims,
                                     activation=self.activation, tm=self.tm)


def ffnn_forward(x, weight, bias, *, activation: str = "relu",
                 tm: int = 512, tn: int = 1024, tk: int = 512):
    """One-shot convenience wrapper (prep + forward)."""
    w_kn, b_row, dims = prepare_ffnn_params(weight, bias, tn=tn, tk=tk)
    return ffnn_forward_prepared(x, w_kn, b_row, dims, activation=activation, tm=tm)


def _reference_f32(x, weight, bias, activation="relu"):
    return _apply_activation(x @ weight.T + bias, activation)


def _reference_bf16(x, weight, bias, activation="relu"):
    y = jnp.dot(x.astype(jnp.bfloat16), weight.astype(jnp.bfloat16).T,
                preferred_element_type=jnp.float32) + bias
    return _apply_activation(y, activation)


if __name__ == "__main__":
    key = jax.random.PRNGKey(0)
    k1, k2, k3, k4 = jax.random.split(key, 4)

    # ---- Test 1: small, non-aligned shapes (padding path), default relu ----
    M1, K1, N1 = 64, 96, 80
    x1 = jax.random.normal(k1, (M1, K1), dtype=jnp.float32)
    w1 = jax.random.uniform(k2, (N1, K1), dtype=jnp.float32, minval=0.0, maxval=1.0)
    b1 = jnp.zeros((N1,), dtype=jnp.float32)

    model1 = FFNN(w1, b1, activation="relu")
    out1 = jax.block_until_ready(model1(x1))
    ref1 = _reference_bf16(x1, w1, b1, "relu")
    assert out1.shape == (M1, N1), out1.shape
    assert jnp.allclose(out1, ref1, atol=1e-2, rtol=1e-2), "mismatch vs bf16 reference (test 1)"

    # ---- Test 2: multi-step K reduction (small tiles force several K tiles) ----
    M2, K2, N2 = 128, 384, 256
    x2 = jax.random.normal(k3, (M2, K2), dtype=jnp.float32)
    w2 = jax.random.uniform(k4, (N2, K2), dtype=jnp.float32, minval=0.0, maxval=1.0)
    b2 = jnp.zeros((N2,), dtype=jnp.float32)

    model2 = FFNN(w2, b2, activation="relu", tm=64, tn=128, tk=128)  # 3 K steps
    out2 = jax.block_until_ready(model2(x2))
    ref2_bf16 = _reference_bf16(x2, w2, b2, "relu")
    ref2_f32 = _reference_f32(x2, w2, b2, "relu")
    assert out2.shape == (M2, N2), out2.shape
    assert jnp.allclose(out2, ref2_bf16, atol=2e-2, rtol=2e-2), "mismatch vs bf16 reference (test 2)"
    rel_err = jnp.linalg.norm(out2 - ref2_f32) / jnp.linalg.norm(ref2_f32)
    assert rel_err < 2e-2, f"relative error vs f32 reference too large: {rel_err}"

    print("KERNEL_OK")
</pallas_src>

<mosaic_0001>
module attributes {stable_mosaic.version = 11 : i64} {
  func.func @_ffnn_kernel(%arg0: i32, %arg1: i32, %arg2: i32, %arg3: memref<64x128xbf16, #tpu.memory_space<vmem>>, %arg4: memref<128x128xbf16, #tpu.memory_space<vmem>>, %arg5: memref<1x128xf32, #tpu.memory_space<vmem>>, %arg6: memref<64x128xf32, #tpu.memory_space<vmem>>) attributes {dimension_semantics = [#tpu.dimension_semantics<parallel>, #tpu.dimension_semantics<parallel>, #tpu.dimension_semantics<arbitrary>], iteration_bounds = array<i64: 1, 1, 1>, scalar_prefetch = 0 : i64, scratch_operands = 0 : i64, tpu.core_type = #tpu.core_type<tc>, window_params = [{transform_indices = @transform_0, window_bounds = array<i64: 64, 128>}, {transform_indices = @transform_1, window_bounds = array<i64: 128, 128>}, {transform_indices = @transform_2, window_bounds = array<i64: 1, 128>}, {transform_indices = @transform_3, window_bounds = array<i64: 64, 128>}]} {
    %c0_i32 = arith.constant 0 : i32
    %0 = arith.cmpi eq, %arg2, %c0_i32 : i32
    %1 = arith.extui %0 : i1 to i32
    %c0_i32_0 = arith.constant 0 : i32
    %2 = arith.cmpi ne, %1, %c0_i32_0 : i32
    scf.if %2 {
      %cst_10 = arith.constant 0.000000e+00 : f32
      %12 = vector.broadcast %cst_10 : f32 to vector<64x128xf32>
      %c0_11 = arith.constant 0 : index
      %c0_12 = arith.constant 0 : index
      %13 = vector.load %arg6[%c0_11, %c0_12] : memref<64x128xf32, #tpu.memory_space<vmem>>, vector<64x128xf32>
      tpu.vector_store %arg6[%c0_11, %c0_12], %12 {strides = array<i32>} : memref<64x128xf32, #tpu.memory_space<vmem>>, vector<64x128xf32>,
    } else {
    }
    %c0 = arith.constant 0 : index
    %c0_1 = arith.constant 0 : index
    %3 = vector.load %arg6[%c0, %c0_1] : memref<64x128xf32, #tpu.memory_space<vmem>>, vector<64x128xf32>
    %c0_2 = arith.constant 0 : index
    %c0_3 = arith.constant 0 : index
    %4 = vector.load %arg3[%c0_2, %c0_3] : memref<64x128xbf16, #tpu.memory_space<vmem>>, vector<64x128xbf16>
    %c0_4 = arith.constant 0 : index
    %c0_5 = arith.constant 0 : index
    %5 = vector.load %arg4[%c0_4, %c0_5] : memref<128x128xbf16, #tpu.memory_space<vmem>>, vector<128x128xbf16>
    %cst = arith.constant dense<0.000000e+00> : vector<64x128xf32>
    %6 = tpu.matmul %4, %5, %cst {dimension_numbers = #tpu.dot_dimension_numbers<[1], [0], [0], [1], [0, 0, 1, 1], [], []>} : vector<64x128xbf16>, vector<128x128xbf16>, vector<64x128xf32> -> vector<64x128xf32>
    %7 = arith.addf %3, %6 : vector<64x128xf32>
    %c0_6 = arith.constant 0 : index
    %c0_7 = arith.constant 0 : index
    %8 = vector.load %arg6[%c0_6, %c0_7] : memref<64x128xf32, #tpu.memory_space<vmem>>, vector<64x128xf32>
    tpu.vector_store %arg6[%c0_6, %c0_7], %7 {strides = array<i32>} : memref<64x128xf32, #tpu.memory_space<vmem>>, vector<64x128xf32>,
    %c0_i32_8 = arith.constant 0 : i32
    %9 = arith.cmpi eq, %arg2, %c0_i32_8 : i32
    %10 = arith.extui %9 : i1 to i32
    %c0_i32_9 = arith.constant 0 : i32
    %11 = arith.cmpi ne, %10, %c0_i32_9 : i32
    scf.if %11 {
      %c0_10 = arith.constant 0 : index
      %c0_11 = arith.constant 0 : index
      %12 = vector.load %arg6[%c0_10, %c0_11] : memref<64x128xf32, #tpu.memory_space<vmem>>, vector<64x128xf32>
      %c0_12 = arith.constant 0 : index
      %c0_13 = arith.constant 0 : index
      %13 = vector.load %arg5[%c0_12, %c0_13] : memref<1x128xf32, #tpu.memory_space<vmem>>, vector<1x128xf32>
      %14 = vector.broadcast %13 : vector<1x128xf32> to vector<64x128xf32>
      %15 = arith.addf %12, %14 : vector<64x128xf32>
      %cst_14 = arith.constant 0.000000e+00 : f32
      %16 = vector.broadcast %cst_14 : f32 to vector<64x128xf32>
      %17 = arith.maximumf %15, %16 : vector<64x128xf32>
      %c0_15 = arith.constant 0 : index
      %c0_16 = arith.constant 0 : index
      %18 = vector.load %arg6[%c0_15, %c0_16] : memref<64x128xf32, #tpu.memory_space<vmem>>, vector<64x128xf32>
      tpu.vector_store %arg6[%c0_15, %c0_16], %17 {strides = array<i32>} : memref<64x128xf32, #tpu.memory_space<vmem>>, vector<64x128xf32>,
    } else {
    }
    return
  }
  func.func @transform_0(%arg0: i32, %arg1: i32, %arg2: i32) -> (i32, i32) {
    %c0_i32 = arith.constant 0 : i32
    return %arg0, %arg2 : i32, i32
  }
  func.func @transform_1(%arg0: i32, %arg1: i32, %arg2: i32) -> (i32, i32) {
    %c0_i32 = arith.constant 0 : i32
    return %arg2, %arg1 : i32, i32
  }
  func.func @transform_2(%arg0: i32, %arg1: i32, %arg2: i32) -> (i32, i32) {
    %c0_i32 = arith.constant 0 : i32
    %c0_i32_0 = arith.constant 0 : i32
    return %c0_i32, %arg1 : i32, i32
  }
  func.func @transform_3(%arg0: i32, %arg1: i32, %arg2: i32) -> (i32, i32) {
    %c0_i32 = arith.constant 0 : i32
    return %arg0, %arg1 : i32, i32
  }
}

</mosaic_0001>

<bundles_post_ra>
// kernel: tpu_custom_call.1
= control target key start
LH: loop header
LB: loop body
LE: loop exit
PB: predicated region body
PF: predicated region fallthrough
CT: control target
= control target key end

     0   :  { %8 = vsyncpa [#allocation3], 0  ;;  %s524_s0 = inlined_call_operand.hbm [shape: bf16[64,128], index: 0, kind: input, shape index: {}]   ;;  %s525_s1 = inlined_call_operand.hbm [shape: bf16[128,128], index: 1, kind: input, shape index: {}]   ;;  %s526_s2 = inlined_call_operand.vmem [shape: f32[1,128], index: 2, kind: input, shape index: {}]   ;;  %s527_s3 = inlined_call_operand.hbm [shape: f32[64,128], index: 3, kind: output, shape index: {}]  }
   0x1   :  { %9 = vsyncpa [#allocation6], 0 }
   0x2   :  { %10 = vsyncpa [#allocation4], 0  ;;  %s458_s12 = smov [#allocation2]   ;;  %s386_s16 = scalar_lea.hbm %s524_s0, 512 }
   0x3   :  { %s16_s13 = sshll.u32 %s458_s12, 4  ;;  %p387_p0 = scmp.ne.s32.totalorder %s524_s0, %s386_s16  ;;  %s17_s13 = int_to_ptr.vmem [resolvable:$true] %s16_s13 }
   0x4   :  { %p390_p1 = scmp.lt.u32.totalorder %s386_s16, %s524_s0 }
   0x6   :  { %p392_p2 = pnand %p390_p1, %p387_p0 }
   0x8   :  { %395 = shalt.err (!%p392_p2)
}
   0x9   :  { %s396_s21 = scalar_lea.vmem %s17_s13, 512  ;;  %p401_p4 = scmp.lt.s32.totalorder %s17_s13, %s17_s13 }
   0xa   :  { %p397_p3 = scmp.ne.s32.totalorder %s17_s13, %s396_s21  ;;  %p402_p5 = scmp.lt.s32.totalorder %s396_s21, %s396_s21 }
   0xc   :  { %p403_p6 = por %p402_p5, %p401_p4 }
   0xe   :  { %p404_p7 = pnand %p403_p6, %p397_p3 }
  0x10   :  { %407 = shalt.err (!%p404_p7)
}
  0x11   :  { %s459_s22 = smov 64   ;;  %s460_s23 = smov 4  }
  0x12   :  { %22 = dma.hbm_to_vmem [thread:$0]  %s524_s0, 512, %s17_s13, [#allocation3], %s459_s22, %s459_s22, %s460_s23  }
  0x13   :  { %s461_s26 = smov [#allocation5]   ;;  %s408_s30 = scalar_lea.hbm %s525_s1, 1024 }
  0x14   :  { %s28_s27 = sshll.u32 %s461_s26, 4  ;;  %p409_p8 = scmp.ne.s32.totalorder %s525_s1, %s408_s30  ;;  %s29_s27 = int_to_ptr.vmem [resolvable:$true] %s28_s27 }
  0x15   :  { %p412_p9 = scmp.lt.u32.totalorder %s408_s30, %s525_s1 }
  0x17   :  { %p414_p10 = pnand %p412_p9, %p409_p8 }
  0x19   :  { %417 = shalt.err (!%p414_p10)
}
  0x1a   :  { %s418_s8 = scalar_lea.vmem %s29_s27, 1024  ;;  %p423_p12 = scmp.lt.s32.totalorder %s29_s27, %s29_s27 }
  0x1b   :  { %p419_p11 = scmp.ne.s32.totalorder %s29_s27, %s418_s8  ;;  %p424_p13 = scmp.lt.s32.totalorder %s418_s8, %s418_s8 }
  0x1d   :  { %p425_p0 = por %p424_p13, %p423_p12 }
  0x1f   :  { %p426_p1 = pnand %p425_p0, %p419_p11 }
  0x21   :  { %429 = shalt.err (!%p426_p1)
}
  0x22   :  { %34 = dma.hbm_to_vmem [thread:$0]  %s525_s1, 1024, %s29_s27, [#allocation6], %s459_s22, %s459_s22, %s460_s23  }
  0x23   :  { %452 = dma.done.wait [#allocation3], 512  }
  0x24   :  { %453 = vsyncadd [#allocation3], 4294966784 }
  0x25   :  { %454 = dma.done.wait [#allocation6], 1024  }
  0x26   :  { %455 = vsyncadd [#allocation6], 4294966272  ;;  %v374_v0 = vld [vmem:[#allocation5] sm:$0xff]   ;;  %v375_v1 = vld [vmem:[#allocation5 + $0x8] sm:$0xff]   ;;  %s462_s11 = smov [#allocation7]  }
  0x27   :  { %326 = vmatprep.subr.bf16.mxu0 %v374_v0  ;;  %350 = vmatprep.subr.bf16.mxu1 %v374_v0  ;;  %v376_v2 = vld [vmem:[#allocation5 + $0x10] sm:$0xff]   ;;  %v377_v3 = vld [vmem:[#allocation5 + $0x18] sm:$0xff]   ;;  %v382_v4 = vld [vmem:[#allocation2] sm:$0xff]   ;;  %s288_s12 = sshll.u32 %s462_s11, 4  ;;  %s289_s12 = int_to_ptr.vmem [resolvable:$true] %s288_s12 }
  0x28   :  { %327 = vmatpush3.bf16.msra.mxu0 %v374_v0  ;;  %358 = vmatpush3.bf16.msra.mxu1 %v374_v0  ;;  %v383_v5 = vld [vmem:[#allocation2 + $0x10] sm:$0xff]   ;;  %v378_v6 = vld [vmem:[#allocation5 + $0x20] sm:$0xff]   ;;  %v379_v7 = vld [vmem:[#allocation5 + $0x28] sm:$0xff]   ;;  %p435_p3 = scmp.lt.s32.totalorder %s289_s12, %s289_s12 }
  0x29   :  { %328 = vmatprep.subr.bf16.mxu0 %v375_v1  ;;  %351 = vmatprep.subr.bf16.mxu1 %v375_v1  ;;  %v380_v8 = vld [vmem:[#allocation5 + $0x30] sm:$0xff]   ;;  %v381_v9 = vld [vmem:[#allocation5 + $0x38] sm:$0xff]   ;;  %v384_v10 = vld [vmem:[#allocation2 + $0x8] sm:$0xff]  }
  0x2a   :  { %342 = vmatprep.mubr.bf16.mxu0 %v382_v4  ;;  %346 = vmatprep.mubr.bf16.mxu1 %v383_v5  ;;  %v385_v11 = vld [vmem:[#allocation2 + $0x18] sm:$0xff]   ;;  %v313_v13 = vld [vmem:[%s526_s2] ss:$0 sm:$0xff]  ;;  %s430_s2 = scalar_lea.vmem %s289_s12, 1024 }
  0x2b   :  { %p431_p2 = scmp.ne.s32.totalorder %s289_s12, %s430_s2  ;;  %p436_p4 = scmp.lt.s32.totalorder %s430_s2, %s430_s2 }
  0x2c   :  { %329 = vmatpush3.bf16.msra.mxu0 %v375_v1  ;;  %359 = vmatpush3.bf16.msra.mxu1 %v375_v1 }
  0x2d   :  { %330 = vmatprep.subr.bf16.mxu0 %v376_v2  ;;  %352 = vmatprep.subr.bf16.mxu1 %v376_v2  ;;  %p437_p5 = por %p436_p4, %p435_p3 }
  0x2f   :  { %p438_p6 = pnand %p437_p5, %p431_p2 }
  0x30   :  { %331 = vmatpush3.bf16.msra.mxu0 %v376_v2  ;;  %360 = vmatpush3.bf16.msra.mxu1 %v376_v2 }
  0x31   :  { %332 = vmatprep.subr.bf16.mxu0 %v377_v3  ;;  %353 = vmatprep.subr.bf16.mxu1 %v377_v3 }
  0x34   :  { %333 = vmatpush3.bf16.msra.mxu0 %v377_v3  ;;  %361 = vmatpush3.bf16.msra.mxu1 %v377_v3 }
  0x35   :  { %334 = vmatprep.subr.bf16.mxu0 %v378_v6  ;;  %354 = vmatprep.subr.bf16.mxu1 %v378_v6 }
  0x38   :  { %335 = vmatpush3.bf16.msra.mxu0 %v378_v6  ;;  %362 = vmatpush3.bf16.msra.mxu1 %v378_v6 }
  0x39   :  { %336 = vmatprep.subr.bf16.mxu0 %v379_v7  ;;  %355 = vmatprep.subr.bf16.mxu1 %v379_v7 }
  0x3c   :  { %337 = vmatpush3.bf16.msra.mxu0 %v379_v7  ;;  %363 = vmatpush3.bf16.msra.mxu1 %v379_v7 }
  0x3d   :  { %338 = vmatprep.subr.bf16.mxu0 %v380_v8  ;;  %356 = vmatprep.subr.bf16.mxu1 %v380_v8 }
  0x40   :  { %339 = vmatpush3.bf16.msra.mxu0 %v380_v8  ;;  %364 = vmatpush3.bf16.msra.mxu1 %v380_v8 }
  0x41   :  { %340 = vmatprep.subr.bf16.mxu0 %v381_v9  ;;  %357 = vmatprep.subr.bf16.mxu1 %v381_v9 }
  0x44   :  { %341 = vmatpush3.bf16.msra.mxu0 %v381_v9  ;;  %365 = vmatpush3.bf16.msra.mxu1 %v381_v9 }
  0x47   :  { %343 = vmatmul.mubr.bf16.vlgmr.msra.gmra.mrb[0].mxu0 %v384_v10  ;;  %347 = vmatmul.mubr.bf16.vlgmr.msra.gmra.mrb[0].mxu1 %v385_v11 }
 0x11a   :  { %v344_v12 = vpop.f32.mrb[0].mxu0  ;;  %v348_v14 = vpop.f32.mrb[0].mxu1 }
 0x11b   :  { %v194_v15 = vpop.f32.mrb[1].mxu0  ;;  %v210_v16 = vpop.f32.mrb[1].mxu1  ;;  %v261_v19 = vadd.f32 %v344_v12, %v313_v13  ;;  %v265_v20 = vadd.f32 %v348_v14, %v313_v13 }
 0x11c   :  { %v345_v17 = vpop.f32.mrb[2].mxu0  ;;  %v349_v18 = vpop.f32.mrb[2].mxu1  ;;  %v259_v23 = vadd.f32 %v313_v13, %v194_v15  ;;  %v263_v24 = vadd.f32 %v313_v13, %v210_v16 }
 0x11d   :  { %v197_v21 = vpop.f32.mrb[3].mxu0  ;;  %v213_v22 = vpop.f32.mrb[3].mxu1  ;;  %v269_v25 = vmax.f32 %v261_v19, 0.0  ;;  %v273_v26 = vmax.f32 %v265_v20, 0.0  ;;  %v262_v27 = vadd.f32 %v345_v17, %v313_v13  ;;  %v266_v28 = vadd.f32 %v349_v18, %v313_v13 }
 0x11e   :  { %v267_v29 = vmax.f32 %v259_v23, 0.0  ;;  %v271_v30 = vmax.f32 %v263_v24, 0.0  ;;  %v260_v31 = vadd.f32 %v313_v13, %v197_v21  ;;  %v264_v32 = vadd.f32 %v313_v13, %v213_v22 }
 0x11f   :  { %277 = vst [vmem:[#allocation7 + $0x10] sm:$0xff] %v269_v25  ;;  %281 = vst [vmem:[#allocation7 + $0x30] sm:$0xff] %v273_v26  ;;  %v270_v33 = vmax.f32 %v262_v27, 0.0  ;;  %v274_v34 = vmax.f32 %v266_v28, 0.0 }
 0x120   :  { %275 = vst [vmem:[#allocation7] sm:$0xff] %v267_v29  ;;  %279 = vst [vmem:[#allocation7 + $0x20] sm:$0xff] %v271_v30  ;;  %v268_v35 = vmax.f32 %v260_v31, 0.0  ;;  %v272_v36 = vmax.f32 %v264_v32, 0.0 }
 0x121   :  { %278 = vst [vmem:[#allocation7 + $0x18] sm:$0xff] %v270_v33  ;;  %282 = vst [vmem:[#allocation7 + $0x38] sm:$0xff] %v274_v34 }
 0x122   :  { %276 = vst [vmem:[#allocation7 + $0x8] sm:$0xff] %v268_v35  ;;  %280 = vst [vmem:[#allocation7 + $0x28] sm:$0xff] %v272_v36 }
 0x123   :  { %441 = shalt.err (!%p438_p6)
}
 0x124   :  { %s442_s15 = scalar_lea.hbm %s527_s3, 1024 }
 0x125   :  { %p443_p7 = scmp.ne.s32.totalorder %s527_s3, %s442_s15  ;;  %p446_p8 = scmp.lt.u32.totalorder %s442_s15, %s527_s3 }
 0x127   :  { %p448_p9 = pnand %p446_p8, %p443_p7 }
 0x129   :  { %451 = shalt.err (!%p448_p9)
}
 0x12a   :  { %s463_s20 = smov 128   ;;  %s464_s21 = smov 8  }
 0x12b   :  { %294 = dma.vmem_to_hbm [thread:$0]  %s289_s12, 1024, %s527_s3, [#allocation4], %s463_s20, %s463_s20, %s464_s21  }
 0x12c   :  { %456 = dma.done.wait [#allocation4], 1024  }
 0x12d   :  { %457 = vsyncadd [#allocation4], 4294966272 }
 0x12e   :  { %298 = vsyncpa [#allocation3], 1 }
 0x12f   :  { %299 = vsyncpa [#allocation6], 1 }
 0x130   :  { %300 = vsyncpa [#allocation4], 1 }

</bundles_post_ra>
